<compile_context>
chip_gen: v7x
topology: tpu7x:2x2x1
jax: 0.10.0
libtpu: 0.0.40
codegen_flags: <defaults>
</compile_context>

<pallas_src>
import functools
import math

import jax
import jax.numpy as jnp
import numpy as np
from jax.experimental import pallas as pl
from jax.experimental.pallas import tpu as pltpu

_LANE = 128
_SUBLANE = 8


def _round_up(x, m):
    return (x + m - 1) // m * m


def _vmem_capacity_bytes():
    """Physical VMEM of the local TPU; conservative default if unqueryable."""
    try:
        return int(pltpu.get_tpu_info().vmem_capacity_bytes)
    except Exception:
        return 64 * 1024 * 1024  # v7x per-TensorCore VMEM (smallest current part)


def _kernel_vmem_bytes(V, tv, N, SK, Kp, p_buffers):
    """Rough per-step VMEM footprint in bytes, incl. pipeline buffers/padding."""
    p_blk = _round_up(V, _SUBLANE) * SK * 4 * p_buffers
    idx_blk = 2 * _round_up(tv, _SUBLANE) * _round_up(N, _LANE) * 4
    out_blk = 2 * _round_up(tv, _SUBLANE) * Kp * 4
    redw_blk = 2 * _round_up(SK, _SUBLANE) * Kp * 4
    temps = 6 * tv * SK * 4          # gather / relu / running-max temporaries
    return p_blk + idx_blk + out_blk + redw_blk + temps + (2 << 20)


def _pick_tile(V, bs, N, SK, Kp, vmem_budget):
    """Largest vertex tile that divides V, fits VMEM, and keeps >= 4 grid steps."""
    divisors = [t for t in (512, 256, 128, 64, 32, 16, 8) if V % t == 0]
    if not divisors:
        return V  # V not a multiple of 8: single full-V tile (block == array dim)
    tv = next((t for t in divisors
               if _kernel_vmem_bytes(V, t, N, SK, Kp, p_buffers=1) <= vmem_budget),
              divisors[-1])
    # v7x has 2 TensorCores per chip: keep bs * (V // tv) >= 4 so the
    # (both-"parallel") grid shards across cores and the pipeline stays busy.
    while bs * (V // tv) < 4:
        smaller = [t for t in divisors if t < tv]
        if not smaller:
            break
        tv = smaller[0]
    return tv


def _operator3d_kernel(idx_ref, p_ref, redw_ref, out_ref,
                       *, V, N, SK, tv, use_take_gather):
    """One (batch, vertex-tile) step: gather -> relu -> max over N -> weighted sum."""
    idx = idx_ref[0]                  # (tv, N)  i32 neighbor ids for this tile
    p_all = p_ref[0]                  # (V, SK)  f32 projected vertices (gather src)

    # Center rows: slice the already-resident full-p block (dedup'd input).
    v0 = pl.multiple_of(pl.program_id(1) * tv, tv)
    p_c = p_ref[0, pl.ds(v0, tv), :]                     # (tv, SK) f32

    # Running max over neighbors; relu(...) >= 0 so the zero init is exact.
    # N is small & static: the loop is fully unrolled (same trace as
    # fori_loop(unroll=True)) and per-iteration temporaries are only (tv, SK).
    theta_max = jnp.zeros((tv, SK), jnp.float32)
    if use_take_gather:
        # O(tv*N*SK) sublane row gather from the VMEM-resident p.
        # mode="clip" matches XLA's clamped gather for out-of-range indices.
        for n in range(N):
            p_n = jnp.take(p_all, idx[:, n], axis=0, mode="clip")    # (tv, SK)
            theta_max = jnp.maximum(theta_max, jnp.maximum(p_n - p_c, 0.0))
    else:
        # Fallback: one-hot MXU gather.  one-hot values are exactly 0/1 in
        # bf16; p is bf16-rounded so the gather is a single-pass bf16 matmul.
        col = jax.lax.broadcasted_iota(jnp.int32, (tv, V), 1)
        p_bf = p_all.astype(jnp.bfloat16)
        for n in range(N):
            one_hot = (idx[:, n:n + 1] == col).astype(jnp.bfloat16)  # (tv, V)
            p_n = jnp.dot(one_hot, p_bf, preferred_element_type=jnp.float32)
            theta_max = jnp.maximum(theta_max, jnp.maximum(p_n - p_c, 0.0))

    # Weighted support sum: red_w folds the kernel weights and is zero-padded
    # to Kp >= 128 columns -> lane-dense unmasked stores, full MXU columns.
    out_ref[0] = jnp.dot(theta_max, redw_ref[...],
                         preferred_element_type=jnp.float32).astype(out_ref.dtype)


def _build_operator3d_call(bs, V, N, SK, Kp, tv, *, use_take_gather,
                           single_buffer_p, vmem_limit):
    kernel = functools.partial(_operator3d_kernel, V=V, N=N, SK=SK, tv=tv,
                               use_take_gather=use_take_gather)

    # The full-V p block only changes with the batch index, so double
    # buffering buys nothing within a batch: single-buffer it when requested.
    p_spec_kwargs = dict(pipeline_mode=pl.Buffered(1)) if single_buffer_p else {}
    in_specs = [
        pl.BlockSpec((1, tv, N), lambda b, v: (b, v, 0)),          # neighbor ids
        pl.BlockSpec((1, V, SK), lambda b, v: (b, 0, 0),           # resident p
                     **p_spec_kwargs),
        pl.BlockSpec((SK, Kp), lambda b, v: (0, 0)),               # folded weights
    ]
    out_specs = pl.BlockSpec((1, tv, Kp), lambda b, v: (b, v, 0))

    gather_flops = (2 * bs * V * N * V * SK) if not use_take_gather else 0
    flops = gather_flops + 3 * bs * V * N * SK + 2 * bs * V * SK * Kp
    bytes_accessed = (bs * V * N * 4 + bs * V * SK * 4 + SK * Kp * 4
                      + bs * V * Kp * 4)

    return pl.pallas_call(
        kernel,
        out_shape=jax.ShapeDtypeStruct((bs, V, Kp), jnp.float32),
        grid=(bs, V // tv),
        in_specs=in_specs,
        out_specs=out_specs,
        compiler_params=pltpu.CompilerParams(
            dimension_semantics=("parallel", "parallel"),
            vmem_limit_bytes=vmem_limit),
        cost_estimate=pl.CostEstimate(
            flops=flops, transcendentals=0, bytes_accessed=bytes_accessed),
    )


# Kernel configurations tried in order; the first one that lowers and runs on
# the local TPU / jaxlib is cached for the rest of the process.  (0) is the
# intended fast path; (2) is a conservative fallback matching the previously
# validated structure.  (Feature probing only happens on eager calls; under
# jit the first config is used directly.)
_CONFIGS = (
    dict(use_take_gather=True, single_buffer_p=True),
    dict(use_take_gather=True, single_buffer_p=False),
    dict(use_take_gather=False, single_buffer_p=False),
)
_chosen_config = [None]


def operator3d_forward(neighbor_index, vertices, weights, displacement):
    """weights: (1, 1, S, K), displacement: (3, S*K) -> (bs, V, K)."""
    bs, V, N = neighbor_index.shape
    _, _, S, K = weights.shape
    SK = S * K
    Kp = _round_up(max(K, _LANE), _LANE)       # lane-dense padded output width

    neighbor_index = neighbor_index.astype(jnp.int32)
    vertices = vertices.astype(jnp.float32)
    disp = displacement.astype(jnp.float32)

    # Linearity: (neighbor - center) @ D == neighbor @ D - center @ D, so the
    # 3-wide contraction runs once per vertex here; the kernel never touches
    # the 3-wide tensors.
    p = jnp.einsum('bvd,dk->bvk', vertices, disp,
                   precision=jax.lax.Precision.HIGHEST)            # (bs, V, SK)

    # Fold the kernel weights into the support-sum reduction matrix and pad to
    # Kp columns (zeros beyond K) for lane-dense output stores.
    w_flat = weights.reshape(SK).astype(jnp.float32)
    rows = jnp.arange(SK)
    red_w = ((rows[:, None] % K == jnp.arange(Kp)[None, :]).astype(jnp.float32)
             * w_flat[:, None])                                    # (SK, Kp)

    # VMEM budget derived from the actual device (64 MiB v7x, 128 MiB v5e/v6e).
    vmem_budget = int(_vmem_capacity_bytes() * 0.85)
    tv = _pick_tile(V, bs, N, SK, Kp, vmem_budget)
    footprint = _kernel_vmem_bytes(V, tv, N, SK, Kp, p_buffers=1)
    vmem_limit = int(min(vmem_budget, max(2 * footprint, 64 * 1024 * 1024)))
    # TODO(synk): for V so large that the (V, SK) p slab cannot stay VMEM
    # resident (roughly > 30k vertices on v7x at SK=128), switch p to
    # memory_space=pl.ANY and gather neighbor rows with manual async-copy DMAs.

    def run(cfg):
        call = _build_operator3d_call(bs, V, N, SK, Kp, tv,
                                      vmem_limit=vmem_limit, **cfg)
        return call(neighbor_index, p, red_w)

    if _chosen_config[0] is not None:
        out = run(_chosen_config[0])
    else:
        out, last_err = None, None
        for cfg in _CONFIGS:
            try:
                out = jax.block_until_ready(run(cfg))
                _chosen_config[0] = cfg
                break
            except Exception as e:   # lowering/compile failure -> next config
                last_err = e
        if out is None:
            raise last_err

    return out[..., :K]


def operator3d_reference(neighbor_index, vertices, weights, displacement):
    """Pure-JAX reference matching the PyTorch forward pass exactly."""
    bs, V, N = neighbor_index.shape
    _, _, S, K = weights.shape
    id0 = jnp.arange(bs)[:, None, None]
    neighbors = vertices[id0, neighbor_index]               # (bs, V, N, 3)
    nd = neighbors - vertices[:, :, None, :]                # (bs, V, N, 3)
    theta = jnp.maximum(nd @ displacement, 0.0)             # (bs, V, N, S*K)
    theta = theta.reshape(bs, V, N, S, K)
    theta = jnp.max(theta, axis=2) * weights                # (bs, V, S, K)
    return jnp.sum(theta, axis=2)                           # (bs, V, K)


if __name__ == "__main__":
    bs, V, N = 2, 16, 8          # batch, vertice_num, neighbor_num
    S, K = 4, 32                 # support_num, kernel_num

    key = jax.random.PRNGKey(0)
    k_v, k_i, k_w, k_d = jax.random.split(key, 4)

    vertices = jax.random.normal(k_v, (bs, V, 3), dtype=jnp.float32)
    neighbor_index = jax.random.randint(k_i, (bs, V, N), 0, V, dtype=jnp.int32)

    # deterministic parameter init, matching torch uniform_(-stdv, stdv)
    stdv = 1.0 / math.sqrt(S * K)
    weights = jax.random.uniform(k_w, (1, 1, S, K), jnp.float32, -stdv, stdv)
    displacement = jax.random.uniform(k_d, (3, S * K), jnp.float32, -stdv, stdv)

    out = operator3d_forward(neighbor_index, vertices, weights, displacement)
    out = jax.block_until_ready(out)
    assert out.shape == (bs, V, K)

    ref = operator3d_reference(neighbor_index, vertices, weights, displacement)
    # Tolerances cover default single-pass bf16 MXU precision (and the bf16
    # one-hot fallback path); outputs here are O(0.01 - 0.3).
    np.testing.assert_allclose(np.asarray(out), np.asarray(ref),
                               rtol=2e-2, atol=2e-3)

    print("KERNEL_OK")
</pallas_src>

<mosaic_0001>
module attributes {stable_mosaic.version = 11 : i64} {
  func.func @_operator3d_kernel(%arg0: i32, %arg1: i32, %arg2: memref<1x8x8xi32, #tpu.memory_space<vmem>>, %arg3: memref<1x16x128xf32, #tpu.memory_space<vmem>>, %arg4: memref<128x128xf32, #tpu.memory_space<vmem>>, %arg5: memref<1x8x128xf32, #tpu.memory_space<vmem>>) attributes {dimension_semantics = [#tpu.dimension_semantics<parallel>, #tpu.dimension_semantics<parallel>], iteration_bounds = array<i64: 2, 2>, scalar_prefetch = 0 : i64, scratch_operands = 0 : i64, tpu.core_type = #tpu.core_type<tc>, window_params = [{transform_indices = @transform_0, window_bounds = array<i64: 1, 8, 8>}, {transform_indices = @transform_1, window_bounds = array<i64: 1, 16, 128>}, {pipeline_mode = #tpu.pipeline_mode<synchronous>, transform_indices = @transform_2, window_bounds = array<i64: 128, 128>}, {transform_indices = @transform_3, window_bounds = array<i64: 1, 8, 128>}]} {
    %c0 = arith.constant 0 : index
    %c0_0 = arith.constant 0 : index
    %c0_1 = arith.constant 0 : index
    %0 = vector.load %arg2[%c0, %c0_0, %c0_1] : memref<1x8x8xi32, #tpu.memory_space<vmem>>, vector<1x8x8xi32>
    %1 = vector.shape_cast %0 : vector<1x8x8xi32> to vector<8x8xi32>
    %c0_2 = arith.constant 0 : index
    %c0_3 = arith.constant 0 : index
    %c0_4 = arith.constant 0 : index
    %2 = vector.load %arg3[%c0_2, %c0_3, %c0_4] : memref<1x16x128xf32, #tpu.memory_space<vmem>>, vector<1x16x128xf32>
    %3 = vector.shape_cast %2 : vector<1x16x128xf32> to vector<16x128xf32>
    %c8_i32 = arith.constant 8 : i32
    %4 = arith.muli %arg1, %c8_i32 : i32
    %5 = tpu.assume_multiple %4, 8 : i32
    %c0_5 = arith.constant 0 : index
    %6 = arith.index_cast %5 : i32 to index
    %c0_6 = arith.constant 0 : index
    %7 = vector.load %arg3[%c0_5, %6, %c0_6] : memref<1x16x128xf32, #tpu.memory_space<vmem>>, vector<1x8x128xf32>
    %8 = vector.shape_cast %7 : vector<1x8x128xf32> to vector<8x128xf32>
    %cst = arith.constant 0.000000e+00 : f32
    %9 = vector.broadcast %cst : f32 to vector<8x128xf32>
    %10 = tpu.iota {dimensions = array<i32: 1>} : vector<8x16xi32>
    %11 = arith.truncf %3 : vector<16x128xf32> to vector<16x128xbf16>
    %12 = vector.extract_strided_slice %1 {offsets = [0, 0], sizes = [8, 1], strides = [1, 1]} : vector<8x8xi32> to vector<8x1xi32>
    %13 = vector.broadcast %12 : vector<8x1xi32> to vector<8x16xi32>
    %14 = arith.cmpi eq, %13, %10 : vector<8x16xi32>
    %15 = arith.extui %14 : vector<8x16xi1> to vector<8x16xi32>
    %16 = arith.sitofp %15 : vector<8x16xi32> to vector<8x16xf32>
    %17 = arith.truncf %16 : vector<8x16xf32> to vector<8x16xbf16>
    %cst_7 = arith.constant dense<0.000000e+00> : vector<8x128xf32>
    %18 = tpu.matmul %17, %11, %cst_7 {dimension_numbers = #tpu.dot_dimension_numbers<[1], [0], [0], [1], [0, 0, 1, 1], [], []>} : vector<8x16xbf16>, vector<16x128xbf16>, vector<8x128xf32> -> vector<8x128xf32>
    %19 = arith.subf %18, %8 : vector<8x128xf32>
    %cst_8 = arith.constant 0.000000e+00 : f32
    %20 = vector.broadcast %cst_8 : f32 to vector<8x128xf32>
    %21 = arith.maximumf %19, %20 : vector<8x128xf32>
    %22 = arith.maximumf %9, %21 : vector<8x128xf32>
    %23 = vector.extract_strided_slice %1 {offsets = [0, 1], sizes = [8, 1], strides = [1, 1]} : vector<8x8xi32> to vector<8x1xi32>
    %24 = vector.broadcast %23 : vector<8x1xi32> to vector<8x16xi32>
    %25 = arith.cmpi eq, %24, %10 : vector<8x16xi32>
    %26 = arith.extui %25 : vector<8x16xi1> to vector<8x16xi32>
    %27 = arith.sitofp %26 : vector<8x16xi32> to vector<8x16xf32>
    %28 = arith.truncf %27 : vector<8x16xf32> to vector<8x16xbf16>
    %cst_9 = arith.constant dense<0.000000e+00> : vector<8x128xf32>
    %29 = tpu.matmul %28, %11, %cst_9 {dimension_numbers = #tpu.dot_dimension_numbers<[1], [0], [0], [1], [0, 0, 1, 1], [], []>} : vector<8x16xbf16>, vector<16x128xbf16>, vector<8x128xf32> -> vector<8x128xf32>
    %30 = arith.subf %29, %8 : vector<8x128xf32>
    %cst_10 = arith.constant 0.000000e+00 : f32
    %31 = vector.broadcast %cst_10 : f32 to vector<8x128xf32>
    %32 = arith.maximumf %30, %31 : vector<8x128xf32>
    %33 = arith.maximumf %22, %32 : vector<8x128xf32>
    %34 = vector.extract_strided_slice %1 {offsets = [0, 2], sizes = [8, 1], strides = [1, 1]} : vector<8x8xi32> to vector<8x1xi32>
    %35 = vector.broadcast %34 : vector<8x1xi32> to vector<8x16xi32>
    %36 = arith.cmpi eq, %35, %10 : vector<8x16xi32>
    %37 = arith.extui %36 : vector<8x16xi1> to vector<8x16xi32>
    %38 = arith.sitofp %37 : vector<8x16xi32> to vector<8x16xf32>
    %39 = arith.truncf %38 : vector<8x16xf32> to vector<8x16xbf16>
    %cst_11 = arith.constant dense<0.000000e+00> : vector<8x128xf32>
    %40 = tpu.matmul %39, %11, %cst_11 {dimension_numbers = #tpu.dot_dimension_numbers<[1], [0], [0], [1], [0, 0, 1, 1], [], []>} : vector<8x16xbf16>, vector<16x128xbf16>, vector<8x128xf32> -> vector<8x128xf32>
    %41 = arith.subf %40, %8 : vector<8x128xf32>
    %cst_12 = arith.constant 0.000000e+00 : f32
    %42 = vector.broadcast %cst_12 : f32 to vector<8x128xf32>
    %43 = arith.maximumf %41, %42 : vector<8x128xf32>
    %44 = arith.maximumf %33, %43 : vector<8x128xf32>
    %45 = vector.extract_strided_slice %1 {offsets = [0, 3], sizes = [8, 1], strides = [1, 1]} : vector<8x8xi32> to vector<8x1xi32>
    %46 = vector.broadcast %45 : vector<8x1xi32> to vector<8x16xi32>
    %47 = arith.cmpi eq, %46, %10 : vector<8x16xi32>
    %48 = arith.extui %47 : vector<8x16xi1> to vector<8x16xi32>
    %49 = arith.sitofp %48 : vector<8x16xi32> to vector<8x16xf32>
    %50 = arith.truncf %49 : vector<8x16xf32> to vector<8x16xbf16>
    %cst_13 = arith.constant dense<0.000000e+00> : vector<8x128xf32>
    %51 = tpu.matmul %50, %11, %cst_13 {dimension_numbers = #tpu.dot_dimension_numbers<[1], [0], [0], [1], [0, 0, 1, 1], [], []>} : vector<8x16xbf16>, vector<16x128xbf16>, vector<8x128xf32> -> vector<8x128xf32>
    %52 = arith.subf %51, %8 : vector<8x128xf32>
    %cst_14 = arith.constant 0.000000e+00 : f32
    %53 = vector.broadcast %cst_14 : f32 to vector<8x128xf32>
    %54 = arith.maximumf %52, %53 : vector<8x128xf32>
    %55 = arith.maximumf %44, %54 : vector<8x128xf32>
    %56 = vector.extract_strided_slice %1 {offsets = [0, 4], sizes = [8, 1], strides = [1, 1]} : vector<8x8xi32> to vector<8x1xi32>
    %57 = vector.broadcast %56 : vector<8x1xi32> to vector<8x16xi32>
    %58 = arith.cmpi eq, %57, %10 : vector<8x16xi32>
    %59 = arith.extui %58 : vector<8x16xi1> to vector<8x16xi32>
    %60 = arith.sitofp %59 : vector<8x16xi32> to vector<8x16xf32>
    %61 = arith.truncf %60 : vector<8x16xf32> to vector<8x16xbf16>
    %cst_15 = arith.constant dense<0.000000e+00> : vector<8x128xf32>
    %62 = tpu.matmul %61, %11, %cst_15 {dimension_numbers = #tpu.dot_dimension_numbers<[1], [0], [0], [1], [0, 0, 1, 1], [], []>} : vector<8x16xbf16>, vector<16x128xbf16>, vector<8x128xf32> -> vector<8x128xf32>
    %63 = arith.subf %62, %8 : vector<8x128xf32>
    %cst_16 = arith.constant 0.000000e+00 : f32
    %64 = vector.broadcast %cst_16 : f32 to vector<8x128xf32>
    %65 = arith.maximumf %63, %64 : vector<8x128xf32>
    %66 = arith.maximumf %55, %65 : vector<8x128xf32>
    %67 = vector.extract_strided_slice %1 {offsets = [0, 5], sizes = [8, 1], strides = [1, 1]} : vector<8x8xi32> to vector<8x1xi32>
    %68 = vector.broadcast %67 : vector<8x1xi32> to vector<8x16xi32>
    %69 = arith.cmpi eq, %68, %10 : vector<8x16xi32>
    %70 = arith.extui %69 : vector<8x16xi1> to vector<8x16xi32>
    %71 = arith.sitofp %70 : vector<8x16xi32> to vector<8x16xf32>
    %72 = arith.truncf %71 : vector<8x16xf32> to vector<8x16xbf16>
    %cst_17 = arith.constant dense<0.000000e+00> : vector<8x128xf32>
    %73 = tpu.matmul %72, %11, %cst_17 {dimension_numbers = #tpu.dot_dimension_numbers<[1], [0], [0], [1], [0, 0, 1, 1], [], []>} : vector<8x16xbf16>, vector<16x128xbf16>, vector<8x128xf32> -> vector<8x128xf32>
    %74 = arith.subf %73, %8 : vector<8x128xf32>
    %cst_18 = arith.constant 0.000000e+00 : f32
    %75 = vector.broadcast %cst_18 : f32 to vector<8x128xf32>
    %76 = arith.maximumf %74, %75 : vector<8x128xf32>
    %77 = arith.maximumf %66, %76 : vector<8x128xf32>
    %78 = vector.extract_strided_slice %1 {offsets = [0, 6], sizes = [8, 1], strides = [1, 1]} : vector<8x8xi32> to vector<8x1xi32>
    %79 = vector.broadcast %78 : vector<8x1xi32> to vector<8x16xi32>
    %80 = arith.cmpi eq, %79, %10 : vector<8x16xi32>
    %81 = arith.extui %80 : vector<8x16xi1> to vector<8x16xi32>
    %82 = arith.sitofp %81 : vector<8x16xi32> to vector<8x16xf32>
    %83 = arith.truncf %82 : vector<8x16xf32> to vector<8x16xbf16>
    %cst_19 = arith.constant dense<0.000000e+00> : vector<8x128xf32>
    %84 = tpu.matmul %83, %11, %cst_19 {dimension_numbers = #tpu.dot_dimension_numbers<[1], [0], [0], [1], [0, 0, 1, 1], [], []>} : vector<8x16xbf16>, vector<16x128xbf16>, vector<8x128xf32> -> vector<8x128xf32>
    %85 = arith.subf %84, %8 : vector<8x128xf32>
    %cst_20 = arith.constant 0.000000e+00 : f32
    %86 = vector.broadcast %cst_20 : f32 to vector<8x128xf32>
    %87 = arith.maximumf %85, %86 : vector<8x128xf32>
    %88 = arith.maximumf %77, %87 : vector<8x128xf32>
    %89 = vector.extract_strided_slice %1 {offsets = [0, 7], sizes = [8, 1], strides = [1, 1]} : vector<8x8xi32> to vector<8x1xi32>
    %90 = vector.broadcast %89 : vector<8x1xi32> to vector<8x16xi32>
    %91 = arith.cmpi eq, %90, %10 : vector<8x16xi32>
    %92 = arith.extui %91 : vector<8x16xi1> to vector<8x16xi32>
    %93 = arith.sitofp %92 : vector<8x16xi32> to vector<8x16xf32>
    %94 = arith.truncf %93 : vector<8x16xf32> to vector<8x16xbf16>
    %cst_21 = arith.constant dense<0.000000e+00> : vector<8x128xf32>
    %95 = tpu.matmul %94, %11, %cst_21 {dimension_numbers = #tpu.dot_dimension_numbers<[1], [0], [0], [1], [0, 0, 1, 1], [], []>} : vector<8x16xbf16>, vector<16x128xbf16>, vector<8x128xf32> -> vector<8x128xf32>
    %96 = arith.subf %95, %8 : vector<8x128xf32>
    %cst_22 = arith.constant 0.000000e+00 : f32
    %97 = vector.broadcast %cst_22 : f32 to vector<8x128xf32>
    %98 = arith.maximumf %96, %97 : vector<8x128xf32>
    %99 = arith.maximumf %88, %98 : vector<8x128xf32>
    %c0_23 = arith.constant 0 : index
    %c0_24 = arith.constant 0 : index
    %100 = vector.load %arg4[%c0_23, %c0_24] : memref<128x128xf32, #tpu.memory_space<vmem>>, vector<128x128xf32>
    %cst_25 = arith.constant dense<0.000000e+00> : vector<8x128xf32>
    %101 = tpu.matmul %99, %100, %cst_25 {dimension_numbers = #tpu.dot_dimension_numbers<[1], [0], [0], [1], [0, 0, 1, 1], [], []>} : vector<8x128xf32>, vector<128x128xf32>, vector<8x128xf32> -> vector<8x128xf32>
    %c0_26 = arith.constant 0 : index
    %c0_27 = arith.constant 0 : index
    %c0_28 = arith.constant 0 : index
    %102 = vector.load %arg5[%c0_26, %c0_27, %c0_28] : memref<1x8x128xf32, #tpu.memory_space<vmem>>, vector<1x8x128xf32>
    %103 = vector.shape_cast %102 : vector<1x8x128xf32> to vector<8x128xf32>
    %104 = vector.shape_cast %101 : vector<8x128xf32> to vector<1x8x128xf32>
    tpu.vector_store %arg5[%c0_26, %c0_27, %c0_28], %104 {strides = array<i32>} : memref<1x8x128xf32, #tpu.memory_space<vmem>>, vector<1x8x128xf32>,
    return
  }
  func.func @transform_0(%arg0: i32, %arg1: i32) -> (i32, i32, i32) {
    %c0_i32 = arith.constant 0 : i32
    %c0_i32_0 = arith.constant 0 : i32
    return %arg0, %arg1, %c0_i32 : i32, i32, i32
  }
  func.func @transform_1(%arg0: i32, %arg1: i32) -> (i32, i32, i32) {
    %c0_i32 = arith.constant 0 : i32
    %c0_i32_0 = arith.constant 0 : i32
    %c0_i32_1 = arith.constant 0 : i32
    return %arg0, %c0_i32, %c0_i32_0 : i32, i32, i32
  }
  func.func @transform_2(%arg0: i32, %arg1: i32) -> (i32, i32) {
    %c0_i32 = arith.constant 0 : i32
    %c0_i32_0 = arith.constant 0 : i32
    %c0_i32_1 = arith.constant 0 : i32
    return %c0_i32, %c0_i32_0 : i32, i32
  }
  func.func @transform_3(%arg0: i32, %arg1: i32) -> (i32, i32, i32) {
    %c0_i32 = arith.constant 0 : i32
    %c0_i32_0 = arith.constant 0 : i32
    return %arg0, %arg1, %c0_i32 : i32, i32, i32
  }
}

</mosaic_0001>

<bundles_post_ra>
// kernel: tpu_custom_call.1
= control target key start
LH: loop header
LB: loop body
LE: loop exit
PB: predicated region body
PF: predicated region fallthrough
CT: control target
= control target key end

     0   :  { %8 = vsyncpa [#allocation3], 0  ;;  %s1549_s0 = inlined_call_operand.vmem [shape: s32[2,16,8], index: 0, kind: input, shape index: {}]   ;;  %s1550_s1 = inlined_call_operand.vmem [shape: f32[2,16,128], index: 1, kind: input, shape index: {}]   ;;  %s1551_s2 = inlined_call_operand.hbm [shape: f32[128,128], index: 2, kind: input, shape index: {}]   ;;  %s1552_s3 = inlined_call_operand.hbm [shape: f32[2,16,128], index: 3, kind: output, shape index: {}]  }
   0x1   :  { %9 = vsyncpa [#allocation4], 0 }
   0x2   :  { %11 = vsyncpa [#allocation4 + $0x1], 0  ;;  %s1313_s12 = smov 0   ;;  %s1315_s13 = smov 0  }
   0x3   :  { %s1317_s14 = smov 0   ;;  %s1319_s15 = smov 0  }
   0x4   :  { %s1321_s16 = smov 0   ;;  %s1323_s17 = smov 0  }
   0x5   :  { %s1325_s18 = smov 0   ;;  %s1327_s19 = smov 0  }
   0x6 LB: > { %s871_s20 = sadd.s32 4294967295, %s1276_s19   ;;  %s872_s21 = sadd.s32 4294967294, %s1276_s19   ;;  %s1276_s19 = sphi %s1327_s19, %s17_s19   ;;  %s1272_s18 = sphi %s1325_s18, %s1572_s18   ;;  %s1268_s17 = sphi %s1323_s17, %s1571_s17   ;;  %s1264_s16 = sphi %s1321_s16, %s1570_s16   ;;  %s1260_s15 = sphi %s1319_s15, %s1569_s15   ;;  %s1256_s14 = sphi %s1317_s14, %s1568_s14   ;;  %s1252_s13 = sphi %s1315_s13, %s1567_s13   ;;  %s1248_s12 = sphi %s1313_s12, %s1566_s12  }
   0x7   : > { %s26_s22 = sadd.s32 1, %s1268_s17  ;;  %s29_s23 = sadd.s32 1, %s1272_s18 }
   0x8   : > { %p27_p0 = scmp.ge.s32.totalorder %s26_s22, 2  ;;  %s113_s24 = sadd.s32 1, %s1256_s14 }
   0x9   : > { %p123_p1 = scmp.ne.s32.totalorder %s1256_s14, %s1252_s13  ;;  %p124_p2 = scmp.eq.s32.totalorder %s871_s20, 3 }
   0xa   : > { %s1574_s22 = smov (%p27_p0, %s26_s22), 0  ;;  %s1576_s23 = smov (!%p27_p0, %s29_s23), %s1272_s18 }
   0xb   : > { %s109_s25 = ssub.s32 %s1268_s17, %s1574_s22  ;;  %p1365_p3 = por %p124_p2, %p123_p1 }
   0xc   : > { %p31_p4 = scmp.ge.s32.totalorder %s1576_s23, 2  ;;  %p129_p5 = scmp.ne.s32.totalorder %s1252_s13, %s1248_s12 }
   0xd   : > { %s1557_s26 = scalar_select %p1365_p3, 1, 0 }
   0xe   : > { %p130_p6 = scmp.eq.s32.totalorder %s872_s21, 3  ;;  %p873_p7 = scmp.ge.s32.totalorder %s1276_s19, 1 }
   0xf   : > { %s1578_s23 = smov (%p31_p4, %s1576_s23), 0  ;;  %p137_p9 = scmp.lt.s32.totalorder %s1276_s19, 5 }
  0x10   : > { %p1374_p8 = por %p130_p6, %p129_p5  ;;  %s108_s28 = ssub.s32 %s1272_s18, %s1578_s23 }
  0x11   : > { %s110_s29 = sor.u32 %s109_s25, %s108_s28  ;;  %p1381_p10 = pnand %p873_p7, %p137_p9 }
  0x12   : > { %s1558_s27 = scalar_select %p1374_p8, 1, 0 }
  0x13   : > { %s1559_s30 = scalar_select %p1381_p10, 1, 0 }
  0x14   : > { %p111_p11 = scmp.eq.s32.totalorder %s110_s29, 0  ;;  %p1385_p12 = scmp.eq.s32.totalorder %s871_s20, 0 }
  0x15   : > { %p1052_p13 = pneg %p1381_p10  ;;  %s1278_s6 = smov [#allocation2]  }
  0x16   : > { %s1560_s4 = scalar_select %p1385_p12, 1, 0 }
  0x17   : > { %s1392_s5 = scalar_select %p111_p11, %s1256_s14, %s113_s24  }
  0x18   : > { %s149_s7 = sshll.u32 %s1278_s6, 4  ;;  %p1396_p0 = pnand %p1385_p12, %p1052_p13  ;;  %s150_s7 = int_to_ptr.vmem [resolvable:$true] %s149_s7 }
  0x19   : > { %s1150_s11 = scalar_lea.hbm %s1551_s2, 2048 }
  0x1a   : > { %p1151_p1 = scmp.ne.s32.totalorder %s1551_s2, %s1150_s11  ;;  %p1152_p2 = pneg %p1396_p0 }
  0x1b   : > { %p1157_p6 = scmp.lt.u32.totalorder %s1150_s11, %s1551_s2 }
  0x1c   : > { %p1153_p4 = pnand %p1152_p2, %p1151_p1 }
  0x1e   : > { %p1154_p5 = pneg %p1153_p4 }
  0x20   : > { %p1159_p7 = pnand %p1157_p6, %p1154_p5 }
  0x22   : > { %1162 = shalt.err (!%p1159_p7)
}
  0x23   : > { %s1163_s28 = scalar_lea.vmem %s150_s7, 2048  ;;  %p1171_p8 = scmp.lt.s32.totalorder %s150_s7, %s150_s7 }
  0x24   : > { %p1164_p9 = scmp.ne.s32.totalorder %s150_s7, %s1163_s28  ;;  %p1172_p3 = scmp.lt.s32.totalorder %s1163_s28, %s1163_s28 }
  0x26   : > { %p1166_p11 = pnand %p1164_p9, %p1152_p2  ;;  %p1173_p12 = por %p1172_p3, %p1171_p8 }
  0x28   : > { %p1167_p13 = pneg %p1166_p11 }
  0x2a   : > { %p1174_p10 = pnand %p1173_p12, %p1167_p13 }
  0x2c   : > { %1177 = shalt.err (!%p1174_p10)
}
  0x2d   : > { %s1279_s29 = smov 128   ;;  %s1280_s6 = smov 8  }
  0x2e   : > { %1055 = dma.hbm_to_vmem [thread:$0]  (!%p1396_p0), %s1551_s2, 2048, %s150_s7, [#allocation3], %s1279_s29, %s1279_s29, %s1280_s6  }
  0x2f   : > { %p1562_p1 = scmp.ne.s32.totalorder %s1559_s30, 0 }
  0x30   : > { %p1563_p4 = scmp.ne.s32.totalorder (!%p1562_p1), %s1560_s4, 0 }
  0x31   : > { %184 = sbr.rel (%p1562_p1) target bundleno = 682 (0x2aa), region = 32 }
  0x38   : > { %1239 = dma.done.wait (%p1563_p4), [#allocation3], 2048  }
  0x39   : > { %1241 = vsyncadd (%p1563_p4), [#allocation3], 4294965248  ;;  %p216_p3 = scmp.lt.s32.totalorder %s1264_s16, 1  ;;  %p218_p8 = scmp.lt.s32.totalorder %s1260_s15, 1  ;;  %v1281_v0 = vmov 0   ;;  %v1282_v1 = vmov 2   ;;  %v236_v13 = vlaneseq }
  0x3a   : > { %1141 = vset.pattern.permute.xlu0 %v1281_v0  ;;  %1143 = vset.pattern.permute.xlu1 %v1282_v1  ;;  %v1283_v2 = vmov 0.0   ;;  %vm1284_vm0 = vmmov 0   ;;  %v1285_v7 = vmov 1   ;;  %v1286_v8 = vmov 3   ;;  %v664_v39 = vld [vmem:[#allocation2] sm:$0xff]  ;;  %v665_v40 = vld [vmem:[#allocation2 + $0x8] sm:$0xff] }
  0x3b   : > { %s217_s8 = scalar_select %p216_p3, %s1264_s16, 1  ;;  %939 = vmatprep.subr.bf16.mxu1 %v1283_v2  ;;  %963 = vmatprep.subr.bf16.mxu0 %v1283_v2  ;;  %v1287_v9 = vmov 4   ;;  %v1288_v10 = vmov 5   ;;  %v1289_v11 = vmov 6   ;;  %v1290_v12 = vmov 7   ;;  %v666_v43 = vld [vmem:[#allocation2 + $0x10] sm:$0xff] }
  0x3c   : > { %s219_s7 = scalar_select %p218_p8, %s1260_s15, 1  ;;  %941 = vmatprep.mubr.msk.bf16.mxu1 %vm1284_vm0, %v1283_v2  ;;  %965 = vmatprep.mubr.msk.bf16.mxu0 %vm1284_vm0, %v1283_v2  ;;  %v237_v14 = vand.u32 127, %v236_v13  ;;  %vm246_vm2 = vcmask 130048   ;;  %v1291_v41 = vmov 0.0|0.0   ;;  %v1023_v42 = vpack.c.bf16 %v665_v40, %v664_v39  ;;  %v667_v44 = vld [vmem:[#allocation2 + $0x18] sm:$0xff]  ;;  %v668_v46 = vld [vmem:[#allocation2 + $0x20] sm:$0xff] }
  0x3d   : > { %s879_s30 = sshll.u32 %s217_s8, 1  ;;  %s905_s4 = sshll.u32 %s217_s8, 4  ;;  %v1026_v45 = vpack.c.bf16 %v667_v44, %v666_v43  ;;  %v669_v47 = vld [vmem:[#allocation2 + $0x28] sm:$0xff]  ;;  %v670_v49 = vld [vmem:[#allocation2 + $0x30] sm:$0xff]  ;;  %v671_v50 = vld [vmem:[#allocation2 + $0x38] sm:$0xff] }
  0x3e   : > { %s221_s11 = sadd.s32 %s879_s30, %s219_s7  ;;  %s1431_s24 = scalar_lea.vmem %s1550_s1, %s905_s4  ;;  %v1029_v48 = vpack.c.bf16 %v669_v47, %v668_v46  ;;  %v1032_v51 = vpack.c.bf16 %v671_v50, %v670_v49  ;;  %v672_v52 = vld [vmem:[#allocation2 + $0x40] sm:$0xff]  ;;  %v673_v53 = vld [vmem:[#allocation2 + $0x48] sm:$0xff]  ;;  %v674_v55 = vld [vmem:[#allocation2 + $0x50] sm:$0xff] }
  0x3f   : > { %s880_s25 = sshll.u32 %s221_s11, 3  ;;  %v231_v3 = vld [vmem:[%s1431_s24] sm:$0xff]  ;;  %v232_v4 = vld [vmem:[%s1431_s24 + $0x8] sm:$0xff]  ;;  %v1035_v54 = vpack.c.bf16 %v673_v53, %v672_v52  ;;  %v675_v56 = vld [vmem:[#allocation2 + $0x58] sm:$0xff]  ;;  %s883_s9 = sshll.u32 %s1260_s15, 3 }
  0x40   : > { %s223_s6 = scalar_lea.vmem %s1549_s0, %s880_s25  ;;  %v1438_v6 = vpack.c.bf16 %v232_v4, %v231_v3  ;;  %v1038_v57 = vpack.c.bf16 %v675_v56, %v674_v55  ;;  %v676_v58 = vld [vmem:[#allocation2 + $0x60] sm:$0xff]  ;;  %v677_v59 = vld [vmem:[#allocation2 + $0x68] sm:$0xff]  ;;  %v678_v61 = vld [vmem:[#allocation2 + $0x70] sm:$0xff]  ;;  %s234_s10 = scalar_lea.vmem %s1431_s24, %s883_s9 }
  0x41   : > { %v230_v5 = vld [vmem:[%s223_s6] sm:$0xff]  ;;  %v1041_v60 = vpack.c.bf16 %v677_v59, %v676_v58  ;;  %v679_v62 = vld [vmem:[#allocation2 + $0x78] sm:$0xff]  ;;  %s213_s8 = sand.u32 1, %s1252_s13   ;;  %s901_s30 = sshll.u32 %s1264_s16, 1 }
  0x42   : > { %240 = vperm.xlu0 %1141, %v230_v5   ;;  %347 = vperm.xlu1 %1143, %v230_v5   ;;  %v1044_v63 = vpack.c.bf16 %v679_v62, %v678_v61  ;;  %v235_v0 = vld [vmem:[%s234_s10] sm:$0xff]  ;;  %s878_s7 = sshll.u32 %s213_s8, 3  ;;  %s763_s4 = sadd.s32 %s1260_s15, %s901_s30 }
  0x43   : > { %940 = vmatpush3.bf16.msra.mxu1 %v1438_v6  ;;  %964 = vmatpush3.bf16.msra.mxu0 %v1438_v6  ;;  %s215_s11 = scalar_lea.vmem [#allocation5], %s878_s7  ;;  %s902_s21 = sshll.u32 %s763_s4, 7 }
  0x44   : > { %945 = vmatprep.subr.bf16.mxu1 %v1283_v2  ;;  %975 = vmatprep.subr.bf16.mxu0 %v1283_v2  ;;  %s767_s20 = sshll.u32 %s215_s11, 4  ;;  %s1498_s28 = scalar_lea.hbm %s1552_s3, %s902_s21  ;;  %s1493_s20 = int_to_ptr.vmem [resolvable:$true] %s767_s20 }
  0x45   : > { %s752_s29 = scalar_lea.sflag [#allocation4], %s213_s8  ;;  %s1178_s6 = scalar_lea.vmem %s1493_s20, 128 }
  0x46   : > { %1142 = vset.pattern.permute.xlu0 %v1285_v7  ;;  %1144 = vset.pattern.permute.xlu1 %v1286_v8  ;;  %p1179_p10 = scmp.ne.s32.totalorder %s1493_s20, %s1178_s6  ;;  %p1564_p12 = scmp.ne.s32.totalorder %s1557_s26, 0 }
  0x47   : > { %294 = vperm.xlu0 %1142, %v230_v5   ;;  %400 = vperm.xlu1 %1144, %v230_v5   ;;  %s1292_s15 = smov [#allocation5]  }
  0x48   : > { %p1180_p0 = pnand %p1179_p10, %p1564_p12  ;;  %s1182_s16 = sshll.u32 %s1292_s15, 4  ;;  %s1183_s16 = int_to_ptr.vmem [resolvable:$false] %s1182_s16 }
  0x49   : > { %s1184_s9 = scalar_lea.vmem %s1183_s16, 256  ;;  %p1185_p5 = scmp.lt.s32.totalorder %s1493_s20, %s1183_s16 }
  0x4a   : > { %p1181_p2 = pneg %p1180_p0  ;;  %p1186_p6 = scmp.lt.s32.totalorder %s1184_s9, %s1178_s6 }
  0x4b   : > { %1145 = vset.pattern.permute.xlu1 %v1287_v9  ;;  %1146 = vset.pattern.permute.xlu0 %v1288_v10 }
  0x4c   : > { %453 = vperm.xlu1 %1145, %v230_v5   ;;  %506 = vperm.xlu0 %1146, %v230_v5   ;;  %p1187_p7 = por %p1186_p6, %p1185_p5 }
  0x4e   : > { %p1188_p9 = pnand %p1187_p7, %p1181_p2 }
  0x50   : > { %1147 = vset.pattern.permute.xlu1 %v1289_v11  ;;  %1149 = vset.pattern.permute.xlu0 %v1290_v12 }
  0x51   : > { %559 = vperm.xlu1 %1147, %v230_v5  }
  0x55   : > { %1148 = vset.pattern.permute.xlu1 %v1290_v12 }
  0x56   : > { %612 = vperm.xlu1 %1148, %v230_v5  }
  0xc1   : > { %v241_v15 = vpop.permute.xlu0 %240  ;;  %v348_v16 = vpop.permute.xlu1 %347 }
  0xc2   : > { %vm242_vm1 = vcmp.eq.s32.totalorder %v241_v15, %v237_v14  ;;  %vm349_vm4 = vcmp.eq.s32.totalorder %v348_v16, %v237_v14 }
  0xc3   : > { %v884_v17 = vsel %vm242_vm1, 1.0, %v1283_v2  ;;  %v888_v26 = vsel %vm349_vm4, 1.0, %v1283_v2 }
  0xc4   : > { %v245_v18 = vpack.c.bf16 %v884_v17, %v884_v17  ;;  %v352_v28 = vpack.c.bf16 %v888_v26, %v888_v26 }
  0xc6   : > { %942 = vmatmul.mubr.msk.bf16.vlgmr.msra.gmra.mrb[0].mxu1 %vm246_vm2, %v245_v18  ;;  %v295_v19 = vpop.permute.xlu0 %294  ;;  %v401_v20 = vpop.permute.xlu1 %400 }
  0xc7   : > { %946 = vmatpush3.bf16.msra.mxu1 %v1438_v6  ;;  %vm296_vm3 = vcmp.eq.s32.totalorder %v295_v19, %v237_v14  ;;  %947 = vmatprep.mubr.msk.bf16.mxu1 %vm1284_vm0, %v1283_v2  ;;  %vm402_vm7 = vcmp.eq.s32.totalorder %v401_v20, %v237_v14 }
  0xc8   : > { %v886_v21 = vsel %vm296_vm3, 1.0, %v1283_v2  ;;  %951 = vmatprep.subr.bf16.mxu1 %v1283_v2  ;;  %v890_v31 = vsel %vm402_vm7, 1.0, %v1283_v2 }
  0xc9   : > { %v299_v22 = vpack.c.bf16 %v886_v21, %v886_v21  ;;  %v405_v33 = vpack.c.bf16 %v890_v31, %v890_v31 }
  0xcb   : > { %v454_v23 = vpop.permute.xlu1 %453  ;;  %v507_v32 = vpop.permute.xlu0 %506 }
  0xcc   : > { %vm455_vm5 = vcmp.eq.s32.totalorder %v454_v23, %v237_v14  ;;  %vm508_vm8 = vcmp.eq.s32.totalorder %v507_v32, %v237_v14 }
  0xcd   : > { %v892_v24 = vsel %vm455_vm5, 1.0, %v1283_v2  ;;  %v894_v34 = vsel %vm508_vm8, 1.0, %v1283_v2 }
  0xce   : > { %948 = vmatmul.mubr.msk.bf16.vlgmr.msra.gmra.mrb[4].mxu1 %vm246_vm2, %v299_v22  ;;  %v458_v25 = vpack.c.bf16 %v892_v24, %v892_v24  ;;  %v511_v36 = vpack.c.bf16 %v894_v34, %v894_v34 }
  0xcf   : > { %952 = vmatpush3.bf16.msra.mxu1 %v1438_v6  ;;  %953 = vmatprep.mubr.msk.bf16.mxu1 %vm1284_vm0, %v1283_v2 }
  0xd0   : > { %957 = vmatprep.subr.bf16.mxu1 %v1283_v2  ;;  %966 = vmatmul.mubr.msk.bf16.vlgmr.msra.gmra.mrb[0].mxu0 %vm246_vm2, %v458_v25  ;;  %v560_v27 = vpop.permute.xlu1 %559 }
  0xd1   : > { %vm561_vm6 = vcmp.eq.s32.totalorder %v560_v27, %v237_v14  ;;  %976 = vmatpush3.bf16.msra.mxu0 %v1438_v6  ;;  %977 = vmatprep.mubr.msk.bf16.mxu0 %vm1284_vm0, %v1283_v2 }
  0xd2   : > { %v896_v29 = vsel %vm561_vm6, 1.0, %v1283_v2  ;;  %1022 = vmatprep.subr.bf16.mxu0 %v1291_v41 }
  0xd3   : > { %v564_v30 = vpack.c.bf16 %v896_v29, %v896_v29 }
  0xd5   : > { %v613_v35 = vpop.permute.xlu1 %612 }
  0xd6   : > { %954 = vmatmul.mubr.msk.bf16.vlgmr.msra.gmra.mrb[8].mxu1 %vm246_vm2, %v352_v28  ;;  %vm614_vm9 = vcmp.eq.s32.totalorder %v613_v35, %v237_v14 }
  0xd7   : > { %958 = vmatpush3.bf16.msra.mxu1 %v1438_v6  ;;  %959 = vmatprep.mubr.msk.bf16.mxu1 %vm1284_vm0, %v1283_v2  ;;  %v898_v37 = vsel %vm614_vm9, 1.0, %v1283_v2 }
  0xd8   : > { %969 = vmatprep.subr.bf16.mxu1 %v1283_v2  ;;  %978 = vmatmul.mubr.msk.bf16.vlgmr.msra.gmra.mrb[4].mxu0 %vm246_vm2, %v564_v30  ;;  %v617_v38 = vpack.c.bf16 %v898_v37, %v898_v37 }
  0xd9   : > { %1019 = vmatprep.mubr.msk.f32.mxu0 %vm1284_vm0, %v1283_v2  ;;  %1024 = vmatpush3.bf16.msra.mxu0 %v1023_v42 }
  0xda   : > { %1025 = vmatprep.subr.bf16.mxu0 %v1291_v41 }
  0xdd   : > { %1027 = vmatpush3.bf16.msra.mxu0 %v1026_v45 }
  0xde   : > { %960 = vmatmul.mubr.msk.bf16.vlgmr.msra.gmra.mrb[12].mxu1 %vm246_vm2, %v405_v33  ;;  %1028 = vmatprep.subr.bf16.mxu0 %v1291_v41 }
  0xdf   : > { %970 = vmatpush3.bf16.msra.mxu1 %v1438_v6  ;;  %971 = vmatprep.mubr.msk.bf16.mxu1 %vm1284_vm0, %v1283_v2 }
  0xe0   : > { %981 = vmatprep.subr.bf16.mxu1 %v1283_v2 }
  0xe1   : > { %1030 = vmatpush3.bf16.msra.mxu0 %v1029_v48 }
  0xe2   : > { %1031 = vmatprep.subr.bf16.mxu0 %v1291_v41 }
  0xe5   : > { %1033 = vmatpush3.bf16.msra.mxu0 %v1032_v51 }
  0xe6   : > { %972 = vmatmul.mubr.msk.bf16.vlgmr.msra.gmra.mrb[16].mxu1 %vm246_vm2, %v511_v36  ;;  %1034 = vmatprep.subr.bf16.mxu0 %v1291_v41 }
  0xe7   : > { %982 = vmatpush3.bf16.msra.mxu1 %v1438_v6  ;;  %983 = vmatprep.mubr.msk.bf16.mxu1 %vm1284_vm0, %v1283_v2 }
  0xe9   : > { %1036 = vmatpush3.bf16.msra.mxu0 %v1035_v54 }
  0xea   : > { %1037 = vmatprep.subr.bf16.mxu0 %v1291_v41 }
  0xed   : > { %1039 = vmatpush3.bf16.msra.mxu0 %v1038_v57 }
  0xee   : > { %984 = vmatmul.mubr.msk.bf16.vlgmr.msra.gmra.mrb[20].mxu1 %vm246_vm2, %v617_v38  ;;  %1040 = vmatprep.subr.bf16.mxu0 %v1291_v41 }
  0xf1   : > { %1042 = vmatpush3.bf16.msra.mxu0 %v1041_v60 }
  0xf2   : > { %1043 = vmatprep.subr.bf16.mxu0 %v1291_v41 }
  0xf5   : > { %1045 = vmatpush3.bf16.msra.mxu0 %v1044_v63 }
 0x199   : > { %v284_v1 = vpop.f32.mrb[0].mxu1 }
 0x19a   : > { %v290_v2 = vsub.f32 %v284_v1, %v235_v0  ;;  %v943_v3 = vpop.f32.mrb[1].mxu1 }
 0x19b   : > { %v287_v4 = vpop.f32.mrb[2].mxu1 }
 0x19c   : > { %v944_v5 = vpop.f32.mrb[3].mxu1  ;;  %v291_v6 = vmax.f32 %v290_v2, 0.0 }
 0x19e   : > { %v292_v12 = vmax.f32 %v291_v6, 0.0 }
 0x1a1   : > { %v337_v7 = vpop.f32.mrb[4].mxu1 }
 0x1a2   : > { %v343_v8 = vsub.f32 %v337_v7, %v235_v0  ;;  %v949_v9 = vpop.f32.mrb[5].mxu1 }
 0x1a3   : > { %v340_v10 = vpop.f32.mrb[6].mxu1  ;;  %v496_v11 = vpop.f32.mrb[0].mxu0 }
 0x1a4   : > { %v344_v13 = vmax.f32 %v343_v8, 0.0  ;;  %v950_v14 = vpop.f32.mrb[7].mxu1  ;;  %v502_v15 = vsub.f32 %v496_v11, %v235_v0  ;;  %v967_v16 = vpop.f32.mrb[1].mxu0 }
 0x1a5   : > { %v499_v17 = vpop.f32.mrb[2].mxu0 }
 0x1a6   : > { %v345_v18 = vmax.f32 %v292_v12, %v344_v13  ;;  %v968_v19 = vpop.f32.mrb[3].mxu0  ;;  %v503_v37 = vmax.f32 %v502_v15, 0.0 }
 0x1a9   : > { %v390_v20 = vpop.f32.mrb[8].mxu1 }
 0x1aa   : > { %v396_v21 = vsub.f32 %v390_v20, %v235_v0  ;;  %v955_v22 = vpop.f32.mrb[9].mxu1 }
 0x1ab   : > { %v393_v23 = vpop.f32.mrb[10].mxu1  ;;  %v602_v24 = vpop.f32.mrb[4].mxu0 }
 0x1ac   : > { %v397_v25 = vmax.f32 %v396_v21, 0.0  ;;  %v956_v26 = vpop.f32.mrb[11].mxu1  ;;  %v608_v27 = vsub.f32 %v602_v24, %v235_v0  ;;  %v979_v28 = vpop.f32.mrb[5].mxu0 }
 0x1ad   : > { %v605_v29 = vpop.f32.mrb[6].mxu0 }
 0x1ae   : > { %v398_v30 = vmax.f32 %v345_v18, %v397_v25  ;;  %v980_v31 = vpop.f32.mrb[7].mxu0  ;;  %v609_v46 = vmax.f32 %v608_v27, 0.0 }
 0x1b1   : > { %v443_v32 = vpop.f32.mrb[12].mxu1 }
 0x1b2   : > { %v449_v33 = vsub.f32 %v443_v32, %v235_v0  ;;  %v961_v34 = vpop.f32.mrb[13].mxu1 }
 0x1b3   : > { %v446_v35 = vpop.f32.mrb[14].mxu1 }
 0x1b4   : > { %v450_v36 = vmax.f32 %v449_v33, 0.0  ;;  %v962_v38 = vpop.f32.mrb[15].mxu1 }
 0x1b6   : > { %v451_v39 = vmax.f32 %v398_v30, %v450_v36 }
 0x1b8   : > { %v504_v40 = vmax.f32 %v451_v39, %v503_v37 }
 0x1b9   : > { %v549_v41 = vpop.f32.mrb[16].mxu1 }
 0x1ba   : > { %v555_v42 = vsub.f32 %v549_v41, %v235_v0  ;;  %v973_v43 = vpop.f32.mrb[17].mxu1 }
 0x1bb   : > { %v552_v44 = vpop.f32.mrb[18].mxu1 }
 0x1bc   : > { %v556_v45 = vmax.f32 %v555_v42, 0.0  ;;  %v974_v47 = vpop.f32.mrb[19].mxu1 }
 0x1be   : > { %v557_v48 = vmax.f32 %v504_v40, %v556_v45 }
 0x1c0   : > { %v610_v49 = vmax.f32 %v557_v48, %v609_v46 }
 0x1c1   : > { %v655_v50 = vpop.f32.mrb[20].mxu1 }
 0x1c2   : > { %v661_v51 = vsub.f32 %v655_v50, %v235_v0  ;;  %v985_v52 = vpop.f32.mrb[21].mxu1 }
 0x1c3   : > { %v658_v53 = vpop.f32.mrb[22].mxu1 }
 0x1c4   : > { %v662_v54 = vmax.f32 %v661_v51, 0.0  ;;  %v986_v55 = vpop.f32.mrb[23].mxu1 }
 0x1c6   : > { %v663_v56 = vmax.f32 %v610_v49, %v662_v54 }
 0x1c8   : > { %1020 = vmatmul.mubr.f32.vlgmr.msra.gmra.mrb[8].mxu0 %v663_v56 }
 0x29b   : > { %v746_v57 = vpop.f32.mrb[8].mxu0 }
 0x29c   : > { %750 = vst [vmem:[%s215_s11] sm:$0xff] %v746_v57  ;;  %v1021_v58 = vpop.f32.mrb[9].mxu0 }
 0x29d   : > { %1191 = shalt.err (!%p1188_p9)
}
 0x29e   : > { %s1192_s10 = scalar_lea.hbm %s1498_s28, 128  ;;  %s1196_s30 = scalar_lea.hbm %s1552_s3, 512 }
 0x29f   : > { %p1193_p11 = scmp.ne.s32.totalorder %s1498_s28, %s1192_s10  ;;  %p1197_p4 = scmp.lt.u32.totalorder %s1498_s28, %s1552_s3 }
 0x2a0   : > { %p1198_p3 = scmp.lt.u32.totalorder %s1196_s30, %s1192_s10  ;;  %p1200_p10 = scmp.lt.u32.totalorder %s1192_s10, %s1498_s28 }
 0x2a1   : > { %p1194_p13 = pnand %p1193_p11, %p1564_p12 }
 0x2a2   : > { %p1199_p8 = por %p1198_p3, %p1197_p4 }
 0x2a3   : > { %p1195_p1 = pneg %p1194_p13 }
 0x2a4   : > { %p1201_p0 = por %p1200_p10, %p1199_p8 }
 0x2a6   : > { %p1202_p2 = pnand %p1201_p0, %p1195_p1 }
 0x2a8   : > { %1205 = shalt.err (!%p1202_p2)
}
 0x2a9   : > { %1050 = dma.vmem_to_hbm [thread:$0]  (%p1564_p12), %s1493_s20, 128, %s1498_s28, %s752_s29  }
 0x2aa PF: > { %p1062_p5 = scmp.ge.s32.totalorder %s1276_s19, 2  ;;  %s779_s21 = sand.u32 1, %s1248_s12  }
 0x2ab   : > { %p1565_p6 = scmp.ne.s32.totalorder %s1558_s27, 0  ;;  %s780_s24 = scalar_lea.sflag [#allocation4], %s779_s21 }
 0x2ad   : > { %p1057_p7 = pnand %p1062_p5, %p1565_p6 }
 0x2af   : > { %1243 = dma.done.wait (!%p1057_p7), %s780_s24, 128  }
 0x2b0   : > { %1245 = vsyncadd (!%p1057_p7), %s780_s24, 4294967168  ;;  %s17_s19 = sadd.s32 1, %s1276_s19   ;;  %s1566_s12 = smov %s1252_s13 }
 0x2b1   : > { %p14_p9 = scmp.ge.s32.totalorder %s17_s19, 6   ;;  %s1567_s13 = smov %s1256_s14 }
 0x2b2   : > { %s1568_s14 = smov %s1392_s5  ;;  %s1569_s15 = smov %s1268_s17 }
 0x2b3   : > { %s1570_s16 = smov %s1272_s18  ;;  %s1571_s17 = smov %s1574_s22 }
 0x2b4   : > { %s1572_s18 = smov %s1578_s23  ;;  %16 = sbr.rel (!%p14_p9) target bundleno = 6 (0x6), region = 76 }
 0x2bb   :  { %785 = vsyncpa [#allocation3], 1 }
 0x2bc   :  { %787 = vsyncpa [#allocation3 + $0x1], 1 }
 0x2bd   :  { %788 = vsyncpa [#allocation4], 1 }
 0x2be   :  { %790 = vsyncpa [#allocation4 + $0x1], 1 }

</bundles_post_ra>
